<compile_context>
chip_gen: v6e
topology: v6e:2x2x1
jax: 0.10.0
libtpu: 0.0.40
codegen_flags: <defaults>
</compile_context>

<pallas_src>
import functools

import numpy as np
import jax
import jax.numpy as jnp
from jax import lax
from jax.experimental import pallas as pl
from jax.experimental.pallas import tpu as pltpu


def particular_mlp_kernel(x_ref,
                          w1_ref, b1_ref,
                          w2_ref, b2_ref,
                          w3_ref, b3_ref,
                          w4_ref, b4_ref,
                          o_ref,
                          *, chunk, bf16_tanh):
    """Feature-major 4-layer MLP on one batch tile, processed in lane chunks.

    x_ref  : (D_in, T)    collocation points, batch on lanes (pipelined tile)
    w1_ref : (H, D_in) f32  layer-1 weights (VPU rank-1 FMAs), scale pre-folded
    w2/3/4 : (out, in) bf16 MXU weights, scale pre-folded (resident)
    b*_ref : (out, 1)  f32  biases, scale pre-folded, broadcast over lanes
    o_ref  : (D_out, T) f32 output tile, unmasked lane-dense stores
    """
    D_in, tile_n = x_ref.shape
    n_chunks = tile_n // chunk

    # Resident parameters: loaded once per grid step, reused by every chunk.
    w1 = w1_ref[...]
    b1 = b1_ref[...]
    w2 = w2_ref[...]
    b2 = b2_ref[...]
    w3 = w3_ref[...]
    b3 = b3_ref[...]
    w4 = w4_ref[...]
    b4 = b4_ref[...]

    def act(z):
        # bf16 tanh on v6e/v7x (bf16 EUP); f32 tanh on v5e. Either way the result is
        # cast to bf16 so the next matmul gets single-pass bf16 MXU operands.
        if bf16_tanh:
            return jnp.tanh(z.astype(jnp.bfloat16))
        return jnp.tanh(z).astype(jnp.bfloat16)

    def body(c, carry):
        off = pl.multiple_of(c * chunk, 128)
        xc = x_ref[:, pl.ds(off, chunk)]                   # (D_in, chunk)

        # Layer 1: K = D_in (=2) would waste 126+/128 of the MXU K dim -> VPU FMAs.
        z1 = b1                                            # (H, 1) broadcasts on lanes
        for d in range(D_in):                              # static, tiny (D_in = 2)
            z1 = z1 + w1[:, d:d + 1] * xc[d:d + 1, :]      # rank-1 broadcast FMA
        y1 = act(z1)                                       # (H, chunk) bf16

        # Layers 2-4 on the MXU: (out, H) @ (H, chunk), bf16 in, f32 accumulate.
        y2 = act(jnp.dot(w2, y1, preferred_element_type=jnp.float32) + b2)
        y3 = act(jnp.dot(w3, y2, preferred_element_type=jnp.float32) + b3)
        y = jnp.dot(w4, y3, preferred_element_type=jnp.float32) + b4

        o_ref[:, pl.ds(off, chunk)] = y.astype(o_ref.dtype)
        return carry

    # Chunk loop keeps (H, chunk) activations vreg-resident instead of in VMEM.
    lax.fori_loop(0, n_chunks, body, 0, unroll=(n_chunks <= 8))


def _round_up(a, b):
    return ((a + b - 1) // b) * b


def _default_bf16_tanh():
    # bf16 elementwise math only where the VPU/EUP supports it (v6e / v7x).
    try:
        kind = jax.devices()[0].device_kind.lower()
    except Exception:
        return False
    return any(tag in kind for tag in ("v6", "v7", "tpu7"))


def particular_forward(x, params, scale, *, tile_n=32768, chunk=512, bf16_tanh=None):
    """Forward pass of the `particular` MLP.

    x      : (N, D_in) float32 collocation points (module-native orientation).
    params : dict of PyTorch-orientation weights wk (out, in) and biases bk (out, 1).
    scale  : python float, s = n * a1 (folded into the params once, host-side).
    """
    N, D_in = x.shape
    H = params["w1"].shape[0]
    D_out = params["w4"].shape[0]
    if bf16_tanh is None:
        bf16_tanh = _default_bf16_tanh()

    # Fold the scalar s into every layer: tanh(s*(Wx+b)) == tanh((sW)x + (sb)).
    # Layer-1 weights stay f32 (VPU); layers 2-4 go bf16 for single-pass MXU.
    s = jnp.float32(scale)
    w1 = (s * params["w1"]).astype(jnp.float32)
    b1 = (s * params["b1"]).astype(jnp.float32)
    w2 = (s * params["w2"]).astype(jnp.bfloat16)
    b2 = (s * params["b2"]).astype(jnp.float32)
    w3 = (s * params["w3"]).astype(jnp.bfloat16)
    b3 = (s * params["b3"]).astype(jnp.float32)
    w4 = (s * params["w4"]).astype(jnp.bfloat16)
    b4 = (s * params["b4"]).astype(jnp.float32)

    # --- Tile-size selection -------------------------------------------------
    n_pad = _round_up(max(N, 1), 128)
    # Guarantee >=2 grid steps when possible so v7x's second TensorCore gets work.
    if n_pad >= 256:
        tile_n = min(tile_n, n_pad // 2)
    else:
        tile_n = min(tile_n, n_pad)
    tile_n = max(128, (tile_n // 128) * 128)
    chunk = max(128, min((chunk // 128) * 128, tile_n))
    tile_n = (tile_n // chunk) * chunk                    # tile is whole chunks
    n_pad = _round_up(n_pad, tile_n)
    grid = (n_pad // tile_n,)

    # Feature-major layout, batch padded to a tile multiple.
    # TODO(synk): if the surrounding CPINN code keeps points feature-major (D, N),
    # the transpose/pad here and the final .T can be dropped (pure plumbing).
    x_t = jnp.pad(x.astype(jnp.float32).T, ((0, 0), (0, n_pad - N)))   # (D_in, n_pad)

    def resident(shape):
        # Constant block index -> DMA'd once, stays VMEM-resident across grid steps.
        return pl.BlockSpec(shape, lambda i: (0, 0))

    kernel = functools.partial(particular_mlp_kernel, chunk=chunk, bf16_tanh=bf16_tanh)

    out_t = pl.pallas_call(
        kernel,
        out_shape=jax.ShapeDtypeStruct((D_out, n_pad), jnp.float32),
        grid=grid,
        in_specs=[
            pl.BlockSpec((D_in, tile_n), lambda i: (0, i)),   # x tile (pipelined)
            resident((H, D_in)), resident((H, 1)),            # w1, b1
            resident((H, H)),    resident((H, 1)),            # w2, b2
            resident((H, H)),    resident((H, 1)),            # w3, b3
            resident((D_out, H)), resident((D_out, 1)),       # w4, b4
        ],
        out_specs=pl.BlockSpec((D_out, tile_n), lambda i: (0, i)),
        compiler_params=pltpu.CompilerParams(
            dimension_semantics=("parallel",)),               # megacore shard on v7x
    )(x_t, w1, b1, w2, b2, w3, b3, w4, b4)

    # Back to the module's (N, D_out) orientation; drop padding columns.
    return out_t[:, :N].T


def init_params(key, D_in, H, D_out):
    """Deterministic init matching the PyTorch __init__ statistics.

    Weights kept in PyTorch's (out, in) orientation; biases stored (out, 1)."""
    ks = jax.random.split(key, 8)

    def normal(k, shape, std):
        return (std * jax.random.normal(k, shape)).astype(jnp.float32)

    return {
        "w1": normal(ks[0], (H, D_in),  np.sqrt(2.0 / (D_in + H))),
        "w2": normal(ks[1], (H, H),     np.sqrt(2.0 / (H + H))),
        "w3": normal(ks[2], (H, H),     np.sqrt(2.0 / (H + H))),
        "w4": normal(ks[3], (D_out, H), np.sqrt(2.0 / (H + D_out))),
        "b1": normal(ks[4], (H, 1), 1.0),
        "b2": normal(ks[5], (H, 1), 1.0),
        "b3": normal(ks[6], (H, 1), 1.0),
        "b4": normal(ks[7], (D_out, 1), 1.0),
    }


def reference_forward(x, params, scale):
    """Pure-JAX f32 reference mirroring the PyTorch forward (batch-major)."""
    s = jnp.float32(scale)
    y1 = jnp.tanh(s * (x @ params["w1"].T + params["b1"].T))
    y2 = jnp.tanh(s * (y1 @ params["w2"].T + params["b2"].T))
    y3 = jnp.tanh(s * (y2 @ params["w3"].T + params["b3"].T))
    return s * (y3 @ params["w4"].T + params["b4"].T)


if __name__ == "__main__":
    # Shapes consistent with the CPINN usage: an 11x11 grid of (x, y) collocation
    # points in [-1, 1]^2, hidden width 32, 2-component particular solution.
    D_in, H, D_out = 2, 32, 2
    N_test = 11

    xs = jnp.linspace(-1.0, 1.0, N_test, dtype=jnp.float32)
    gx, gy = jnp.meshgrid(xs, xs, indexing="ij")
    pts = jnp.stack([gx.ravel(), gy.ravel()], axis=-1)      # (121, 2)

    params = init_params(jax.random.PRNGKey(0), D_in, H, D_out)

    # a1 = 0.1, n = 1 / a1  ->  scale = n * a1 = 1.0 (kept explicit for fidelity)
    a1 = np.float32(0.1)
    n = np.float32(1.0) / a1
    scale = float(n * a1)

    out = particular_forward(pts, params, scale)
    out = jax.block_until_ready(out)

    # bf16 MXU operands (f32 accumulation) -> relaxed tolerance vs the f32 reference.
    ref = reference_forward(pts, params, scale)
    np.testing.assert_allclose(np.asarray(out), np.asarray(ref),
                               rtol=2e-2, atol=2e-2)
    assert out.shape == (N_test * N_test, D_out)

    print("KERNEL_OK")
</pallas_src>

<mosaic_0001>
module attributes {stable_mosaic.version = 11 : i64} {
  func.func @particular_mlp_kernel(%arg0: i32, %arg1: memref<2x128xf32, #tpu.memory_space<vmem>>, %arg2: memref<32x2xf32, #tpu.memory_space<vmem>>, %arg3: memref<32x1xf32, #tpu.memory_space<vmem>>, %arg4: memref<32x32xbf16, #tpu.memory_space<vmem>>, %arg5: memref<32x1xf32, #tpu.memory_space<vmem>>, %arg6: memref<32x32xbf16, #tpu.memory_space<vmem>>, %arg7: memref<32x1xf32, #tpu.memory_space<vmem>>, %arg8: memref<2x32xbf16, #tpu.memory_space<vmem>>, %arg9: memref<2x1xf32, #tpu.memory_space<vmem>>, %arg10: memref<2x128xf32, #tpu.memory_space<vmem>>) attributes {dimension_semantics = [#tpu.dimension_semantics<parallel>], iteration_bounds = array<i64: 1>, scalar_prefetch = 0 : i64, scratch_operands = 0 : i64, tpu.core_type = #tpu.core_type<tc>, window_params = [{transform_indices = @transform_0, window_bounds = array<i64: 2, 128>}, {pipeline_mode = #tpu.pipeline_mode<synchronous>, transform_indices = @transform_1, window_bounds = array<i64: 32, 2>}, {pipeline_mode = #tpu.pipeline_mode<synchronous>, transform_indices = @transform_2, window_bounds = array<i64: 32, 1>}, {pipeline_mode = #tpu.pipeline_mode<synchronous>, transform_indices = @transform_3, window_bounds = array<i64: 32, 32>}, {pipeline_mode = #tpu.pipeline_mode<synchronous>, transform_indices = @transform_4, window_bounds = array<i64: 32, 1>}, {pipeline_mode = #tpu.pipeline_mode<synchronous>, transform_indices = @transform_5, window_bounds = array<i64: 32, 32>}, {pipeline_mode = #tpu.pipeline_mode<synchronous>, transform_indices = @transform_6, window_bounds = array<i64: 32, 1>}, {pipeline_mode = #tpu.pipeline_mode<synchronous>, transform_indices = @transform_7, window_bounds = array<i64: 2, 32>}, {pipeline_mode = #tpu.pipeline_mode<synchronous>, transform_indices = @transform_8, window_bounds = array<i64: 2, 1>}, {transform_indices = @transform_9, window_bounds = array<i64: 2, 128>}]} {
    %c0 = arith.constant 0 : index
    %c0_0 = arith.constant 0 : index
    %0 = vector.load %arg2[%c0, %c0_0] : memref<32x2xf32, #tpu.memory_space<vmem>>, vector<32x2xf32>
    %c0_1 = arith.constant 0 : index
    %c0_2 = arith.constant 0 : index
    %1 = vector.load %arg3[%c0_1, %c0_2] : memref<32x1xf32, #tpu.memory_space<vmem>>, vector<32x1xf32>
    %c0_3 = arith.constant 0 : index
    %c0_4 = arith.constant 0 : index
    %2 = vector.load %arg4[%c0_3, %c0_4] : memref<32x32xbf16, #tpu.memory_space<vmem>>, vector<32x32xbf16>
    %c0_5 = arith.constant 0 : index
    %c0_6 = arith.constant 0 : index
    %3 = vector.load %arg5[%c0_5, %c0_6] : memref<32x1xf32, #tpu.memory_space<vmem>>, vector<32x1xf32>
    %c0_7 = arith.constant 0 : index
    %c0_8 = arith.constant 0 : index
    %4 = vector.load %arg6[%c0_7, %c0_8] : memref<32x32xbf16, #tpu.memory_space<vmem>>, vector<32x32xbf16>
    %c0_9 = arith.constant 0 : index
    %c0_10 = arith.constant 0 : index
    %5 = vector.load %arg7[%c0_9, %c0_10] : memref<32x1xf32, #tpu.memory_space<vmem>>, vector<32x1xf32>
    %c0_11 = arith.constant 0 : index
    %c0_12 = arith.constant 0 : index
    %6 = vector.load %arg8[%c0_11, %c0_12] : memref<2x32xbf16, #tpu.memory_space<vmem>>, vector<2x32xbf16>
    %c0_13 = arith.constant 0 : index
    %c0_14 = arith.constant 0 : index
    %7 = vector.load %arg9[%c0_13, %c0_14] : memref<2x1xf32, #tpu.memory_space<vmem>>, vector<2x1xf32>
    %c0_i32 = arith.constant 0 : i32
    %c128_i32 = arith.constant 128 : i32
    %8 = arith.muli %c0_i32, %c128_i32 : i32
    %9 = tpu.assume_multiple %8, 128 : i32
    %c0_15 = arith.constant 0 : index
    %10 = arith.index_cast %9 : i32 to index
    %11 = vector.load %arg1[%c0_15, %10] : memref<2x128xf32, #tpu.memory_space<vmem>>, vector<2x128xf32>
    %12 = vector.extract_strided_slice %0 {offsets = [0, 0], sizes = [32, 1], strides = [1, 1]} : vector<32x2xf32> to vector<32x1xf32>
    %13 = vector.extract_strided_slice %11 {offsets = [0, 0], sizes = [1, 128], strides = [1, 1]} : vector<2x128xf32> to vector<1x128xf32>
    %14 = vector.broadcast %12 : vector<32x1xf32> to vector<32x128xf32>
    %15 = vector.broadcast %13 : vector<1x128xf32> to vector<32x128xf32>
    %16 = arith.mulf %14, %15 : vector<32x128xf32>
    %17 = vector.broadcast %1 : vector<32x1xf32> to vector<32x128xf32>
    %18 = arith.addf %17, %16 : vector<32x128xf32>
    %19 = vector.extract_strided_slice %0 {offsets = [0, 1], sizes = [32, 1], strides = [1, 1]} : vector<32x2xf32> to vector<32x1xf32>
    %20 = vector.extract_strided_slice %11 {offsets = [1, 0], sizes = [1, 128], strides = [1, 1]} : vector<2x128xf32> to vector<1x128xf32>
    %21 = vector.broadcast %19 : vector<32x1xf32> to vector<32x128xf32>
    %22 = vector.broadcast %20 : vector<1x128xf32> to vector<32x128xf32>
    %23 = arith.mulf %21, %22 : vector<32x128xf32>
    %24 = arith.addf %18, %23 : vector<32x128xf32>
    %25 = math.tanh %24 : vector<32x128xf32>
    %26 = arith.truncf %25 : vector<32x128xf32> to vector<32x128xbf16>
    %cst = arith.constant dense<0.000000e+00> : vector<32x128xf32>
    %27 = tpu.matmul %2, %26, %cst {dimension_numbers = #tpu.dot_dimension_numbers<[1], [0], [0], [1], [0, 0, 1, 1], [], []>} : vector<32x32xbf16>, vector<32x128xbf16>, vector<32x128xf32> -> vector<32x128xf32>
    %28 = vector.broadcast %3 : vector<32x1xf32> to vector<32x128xf32>
    %29 = arith.addf %27, %28 : vector<32x128xf32>
    %30 = math.tanh %29 : vector<32x128xf32>
    %31 = arith.truncf %30 : vector<32x128xf32> to vector<32x128xbf16>
    %cst_16 = arith.constant dense<0.000000e+00> : vector<32x128xf32>
    %32 = tpu.matmul %4, %31, %cst_16 {dimension_numbers = #tpu.dot_dimension_numbers<[1], [0], [0], [1], [0, 0, 1, 1], [], []>} : vector<32x32xbf16>, vector<32x128xbf16>, vector<32x128xf32> -> vector<32x128xf32>
    %33 = vector.broadcast %5 : vector<32x1xf32> to vector<32x128xf32>
    %34 = arith.addf %32, %33 : vector<32x128xf32>
    %35 = math.tanh %34 : vector<32x128xf32>
    %36 = arith.truncf %35 : vector<32x128xf32> to vector<32x128xbf16>
    %cst_17 = arith.constant dense<0.000000e+00> : vector<2x128xf32>
    %37 = tpu.matmul %6, %36, %cst_17 {dimension_numbers = #tpu.dot_dimension_numbers<[1], [0], [0], [1], [0, 0, 1, 1], [], []>} : vector<2x32xbf16>, vector<32x128xbf16>, vector<2x128xf32> -> vector<2x128xf32>
    %38 = vector.broadcast %7 : vector<2x1xf32> to vector<2x128xf32>
    %39 = arith.addf %37, %38 : vector<2x128xf32>
    %c0_18 = arith.constant 0 : index
    %40 = arith.index_cast %9 : i32 to index
    %41 = vector.load %arg10[%c0_18, %40] : memref<2x128xf32, #tpu.memory_space<vmem>>, vector<2x128xf32>
    tpu.vector_store %arg10[%c0_18, %40], %39 {strides = array<i32>} : memref<2x128xf32, #tpu.memory_space<vmem>>, vector<2x128xf32>,
    %c1_i32 = arith.constant 1 : i32
    return
  }
  func.func @transform_0(%arg0: i32) -> (i32, i32) {
    %c0_i32 = arith.constant 0 : i32
    %c0_i32_0 = arith.constant 0 : i32
    return %c0_i32, %arg0 : i32, i32
  }
  func.func @transform_1(%arg0: i32) -> (i32, i32) {
    %c0_i32 = arith.constant 0 : i32
    %c0_i32_0 = arith.constant 0 : i32
    %c0_i32_1 = arith.constant 0 : i32
    return %c0_i32, %c0_i32_0 : i32, i32
  }
  func.func @transform_2(%arg0: i32) -> (i32, i32) {
    %c0_i32 = arith.constant 0 : i32
    %c0_i32_0 = arith.constant 0 : i32
    %c0_i32_1 = arith.constant 0 : i32
    return %c0_i32, %c0_i32_0 : i32, i32
  }
  func.func @transform_3(%arg0: i32) -> (i32, i32) {
    %c0_i32 = arith.constant 0 : i32
    %c0_i32_0 = arith.constant 0 : i32
    %c0_i32_1 = arith.constant 0 : i32
    return %c0_i32, %c0_i32_0 : i32, i32
  }
  func.func @transform_4(%arg0: i32) -> (i32, i32) {
    %c0_i32 = arith.constant 0 : i32
    %c0_i32_0 = arith.constant 0 : i32
    %c0_i32_1 = arith.constant 0 : i32
    return %c0_i32, %c0_i32_0 : i32, i32
  }
  func.func @transform_5(%arg0: i32) -> (i32, i32) {
    %c0_i32 = arith.constant 0 : i32
    %c0_i32_0 = arith.constant 0 : i32
    %c0_i32_1 = arith.constant 0 : i32
    return %c0_i32, %c0_i32_0 : i32, i32
  }
  func.func @transform_6(%arg0: i32) -> (i32, i32) {
    %c0_i32 = arith.constant 0 : i32
    %c0_i32_0 = arith.constant 0 : i32
    %c0_i32_1 = arith.constant 0 : i32
    return %c0_i32, %c0_i32_0 : i32, i32
  }
  func.func @transform_7(%arg0: i32) -> (i32, i32) {
    %c0_i32 = arith.constant 0 : i32
    %c0_i32_0 = arith.constant 0 : i32
    %c0_i32_1 = arith.constant 0 : i32
    return %c0_i32, %c0_i32_0 : i32, i32
  }
  func.func @transform_8(%arg0: i32) -> (i32, i32) {
    %c0_i32 = arith.constant 0 : i32
    %c0_i32_0 = arith.constant 0 : i32
    %c0_i32_1 = arith.constant 0 : i32
    return %c0_i32, %c0_i32_0 : i32, i32
  }
  func.func @transform_9(%arg0: i32) -> (i32, i32) {
    %c0_i32 = arith.constant 0 : i32
    %c0_i32_0 = arith.constant 0 : i32
    return %c0_i32, %arg0 : i32, i32
  }
}

</mosaic_0001>

<bundles_post_ra>
// kernel: tpu_custom_call.1
= control target key start
LH: loop header
LB: loop body
LE: loop exit
PB: predicated region body
PF: predicated region fallthrough
CT: control target
= control target key end

     0   :  { %v500_v2 = vmov 0   ;;  %s632_s0 = inlined_call_operand.vmem [shape: f32[2,128], index: 0, kind: input, shape index: {}]   ;;  %s633_s1 = inlined_call_operand.vmem [shape: f32[32,2], index: 1, kind: input, shape index: {}]   ;;  %s634_s2 = inlined_call_operand.vmem [shape: f32[32,1], index: 2, kind: input, shape index: {}]   ;;  %s635_s3 = inlined_call_operand.vmem [shape: bf16[32,32], index: 3, kind: input, shape index: {}]   ;;  %s636_s4 = inlined_call_operand.vmem [shape: f32[32,1], index: 4, kind: input, shape index: {}]   ;;  %s637_s5 = inlined_call_operand.vmem [shape: bf16[32,32], index: 5, kind: input, shape index: {}]   ;;  %s638_s6 = inlined_call_operand.vmem [shape: f32[32,1], index: 6, kind: input, shape index: {}]   ;;  %s639_s7 = inlined_call_operand.vmem [shape: bf16[2,32], index: 7, kind: input, shape index: {}]   ;;  %s640_s8 = inlined_call_operand.vmem [shape: f32[2,1], index: 8, kind: input, shape index: {}]   ;;  %s641_s9 = inlined_call_operand.hbm [shape: f32[2,128], index: 9, kind: output, shape index: {}]  }
   0x1   :  { %v40_v0 = vld [vmem:[%s634_s2 + $0x10] sm:$0xff]  ;;  %443 = vset.pattern.permute.xlu1 %v500_v2  ;;  %442 = vset.pattern.permute.xlu0 %v500_v2  ;;  %v41_v3 = vld [vmem:[%s634_s2 + $0x18] sm:$0xff] }
   0x2   :  { %v36_v1 = vld [vmem:[%s633_s1 + $0x10] sm:$0xff]  ;;  %101 = vperm.xlu1 %443, %v40_v0   ;;  %v37_v4 = vld [vmem:[%s633_s1 + $0x18] sm:$0xff] }
   0x3   :  { %73 = vperm.xlu0 %442, %v36_v1  }
   0x6   :  { %106 = vperm.xlu1 %443, %v41_v3  }
   0x7   :  { %78 = vperm.xlu0 %442, %v37_v4  }
   0x8   :  { %14 = vsyncpa [#allocation3], 0  ;;  %v35_v5 = vld [vmem:[%s633_s1 + $0x8] sm:$0xff]  ;;  %v501_v6 = vmov 1   ;;  %v34_v7 = vld [vmem:[%s633_s1] sm:$0xff]  ;;  %vm177_vm0 = vcmask 261120   ;;  %v81_v20 = vlaneseq }
   0x9   :  { %v38_v8 = vld [vmem:[%s634_s2] sm:$0xff]  ;;  %v39_v9 = vld [vmem:[%s634_s2 + $0x8] sm:$0xff]  ;;  %v48_v11 = vld [vmem:[%s636_s4 + $0x10] sm:$0xff]  ;;  %vm503_vm1 = vmmov 0   ;;  %s504_s25 = smov [#allocation2]  }
   0xa   :  { %444 = vset.pattern.permute.xlu1 %v501_v6  ;;  %v450_v10 = vld [vmem:[%s635_s3] sm:$0xff]   ;;  %v49_v12 = vld [vmem:[%s636_s4 + $0x18] sm:$0xff]  ;;  %v56_v14 = vld [vmem:[%s638_s6 + $0x10] sm:$0xff]  ;;  %v82_v21 = vshrl.u32 %v81_v20, 7  ;;  %s385_s26 = sshll.u32 %s504_s25, 4  ;;  %s386_s26 = int_to_ptr.vmem [resolvable:$true] %s385_s26 }
   0xb   :  { %68 = vperm.xlu0 %442, %v35_v5   ;;  %126 = vperm.xlu1 %444, %v37_v4   ;;  %v46_v13 = vld [vmem:[%s636_s4] sm:$0xff]  ;;  %v47_v15 = vld [vmem:[%s636_s4 + $0x8] sm:$0xff]  ;;  %v57_v17 = vld [vmem:[%s638_s6 + $0x18] sm:$0xff]  ;;  %s478_s27 = scalar_lea.vmem %s386_s26, 32  ;;  %p483_p1 = scmp.lt.s32.totalorder %s386_s26, %s386_s26 }
   0xc   :  { %417 = vmatprep.mubr.msk.bf16.mxu0 %vm177_vm0, %v450_v10  ;;  %v54_v16 = vld [vmem:[%s638_s6] sm:$0xff]  ;;  %v55_v19 = vld [vmem:[%s638_s6 + $0x8] sm:$0xff]  ;;  %v83_v24 = vsub.s32 0, %v82_v21  ;;  %v131_v26 = vsub.s32 1, %v82_v21  ;;  %p479_p0 = scmp.ne.s32.totalorder %s386_s26, %s478_s27  ;;  %p484_p2 = scmp.lt.s32.totalorder %s478_s27, %s478_s27 }
   0xd   :  { %v59_v18 = vld [vmem:[%s640_s8] sm:$0x3]  ;;  %v451_v61 = vld [vmem:[%s635_s3 + $0x8] sm:$0xff]  }
   0xe   :  { %v60_v25 = vld [vmem:[%s632_s0] sm:$0x3]  ;;  %p485_p3 = por %p484_p2, %p483_p1 }
   0xf   :  { %446 = vset.pattern.permute.xlu0 %v501_v6  ;;  %445 = vset.pattern.permute.xlu1 %v500_v2  ;;  %v84_v29 = vrot.slane %v60_v25, %v83_v24  ;;  %v132_v30 = vrot.slane %v60_v25, %v131_v26  ;;  %v452_v62 = vld [vmem:[%s637_s5] sm:$0xff]  }
  0x10   :  { %122 = vperm.xlu0 %446, %v36_v1   ;;  %63 = vperm.xlu1 %445, %v34_v7   ;;  %p486_p4 = pnand %p485_p3, %p479_p0 }
  0x11   :  { %425 = vmatprep.mubr.msk.bf16.mxu1 %vm177_vm0, %v452_v62 }
  0x14   :  { %114 = vperm.xlu0 %446, %v34_v7   ;;  %91 = vperm.xlu1 %445, %v38_v8  }
  0x18   :  { %449 = vset.pattern.permute.xlu0 %v500_v2  ;;  %96 = vperm.xlu1 %445, %v39_v9  }
  0x19   :  { %164 = vperm.xlu0 %449, %v49_v12  }
  0x1c   :  { %447 = vset.pattern.permute.xlu1 %v501_v6 }
  0x1d   :  { %118 = vperm.xlu1 %447, %v35_v5   ;;  %251 = vperm.xlu0 %449, %v56_v14  }
  0x21   :  { %448 = vset.pattern.permute.xlu1 %v500_v2  ;;  %241 = vperm.xlu0 %449, %v54_v16  }
  0x22   :  { %159 = vperm.xlu1 %448, %v48_v11  }
  0x25   :  { %332 = vperm.xlu0 %449, %v59_v18   ;;  %v502_v18 = vmov 0.0  }
  0x26   :  { %149 = vperm.xlu1 %448, %v46_v13  }
  0x2a   :  { %154 = vperm.xlu1 %448, %v47_v15  }
  0x2e   :  { %256 = vperm.xlu1 %448, %v57_v17   ;;  %v453_v17 = vld [vmem:[%s637_s5 + $0x8] sm:$0xff]  }
  0x32   :  { %246 = vperm.xlu1 %448, %v55_v19  }
  0x7d   :  { %v102_v22 = vpop.permute.xlu1 %101 }
  0x7e   :  { %v74_v23 = vpop.permute.xlu0 %73 }
  0x7f   :  { %v87_v34 = vmul.f32 %v84_v29, %v74_v23 }
  0x81   :  { %v107_v27 = vpop.permute.xlu1 %106  ;;  %v111_v39 = vadd.f32 %v102_v22, %v87_v34 }
  0x82   :  { %v79_v28 = vpop.permute.xlu0 %78 }
  0x83   :  { %v88_v31 = vmul.f32 %v84_v29, %v79_v28 }
  0x85   :  { %v112_v36 = vadd.f32 %v107_v27, %v88_v31 }
  0x86   :  { %v69_v32 = vpop.permute.xlu0 %68  ;;  %v127_v33 = vpop.permute.xlu1 %126 }
  0x87   :  { %v136_v35 = vmul.f32 %v132_v30, %v127_v33  ;;  %v86_v49 = vmul.f32 %v84_v29, %v69_v32 }
  0x89   :  { %v140_v37 = vadd.f32 %v136_v35, %v112_v36 }
  0x8b   :  { %v123_v38 = vpop.permute.xlu0 %122  ;;  %v64_v41 = vpop.permute.xlu1 %63  ;;  %454 = vtanh.f32 %v140_v37  ;;  %v58_v37 = vld [vmem:[%s639_s7] sm:$0x1] }
  0x8c   :  { %v135_v40 = vmul.f32 %v132_v30, %v123_v38  ;;  %v85_v45 = vmul.f32 %v84_v29, %v64_v41 }
  0x8e   :  { %v139_v42 = vadd.f32 %v135_v40, %v111_v39 }
  0x8f   :  { %v92_v43 = vpop.permute.xlu1 %91  ;;  %v115_v44 = vpop.permute.xlu0 %114 }
  0x90   :  { %456 = vtanh.f32 %v139_v42  ;;  %v133_v47 = vmul.f32 %v132_v30, %v115_v44  ;;  %v109_v48 = vadd.f32 %v92_v43, %v85_v45 }
  0x92   :  { %v137_v50 = vadd.f32 %v133_v47, %v109_v48 }
  0x93   :  { %v97_v46 = vpop.permute.xlu1 %96 }
  0x94   :  { %v110_v52 = vadd.f32 %v97_v46, %v86_v49  ;;  %458 = vtanh.f32 %v137_v50  ;;  %v165_v4 = vpop.permute.xlu0 %164 }
  0x98   :  { %v119_v51 = vpop.permute.xlu1 %118  ;;  %v455_v54 = vpop.eup %454 }
  0x99   :  { %v134_v53 = vmul.f32 %v132_v30, %v119_v51  ;;  %v252_v19 = vpop.permute.xlu0 %251 }
  0x9b   :  { %v138_v55 = vadd.f32 %v134_v53, %v110_v52 }
  0x9d   :  { %v457_v56 = vpop.eup %456  ;;  %460 = vtanh.f32 %v138_v55  ;;  %v160_v63 = vpop.permute.xlu1 %159 }
  0x9e   :  { %v146_v57 = vpack.c.bf16 %v455_v54, %v457_v56  ;;  %v242_v25 = vpop.permute.xlu0 %241 }
  0xa0   :  { %413 = vmatprep.subr.bf16.mxu0 %v146_v57 }
  0xa1   :  { %414 = vmatpush3.bf16.msra.mxu0 %v146_v57  ;;  %v459_v58 = vpop.eup %458  ;;  %v150_v0 = vpop.permute.xlu1 %149 }
  0xa2   :  { %v333_v38 = vpop.permute.xlu0 %332 }
  0xa5   :  { %v155_v8 = vpop.permute.xlu1 %154 }
  0xa9   :  { %v257_v20 = vpop.permute.xlu1 %256 }
  0xaa   :  { %v461_v59 = vpop.eup %460 }
  0xab   :  { %v145_v60 = vpack.c.bf16 %v461_v59, %v459_v58 }
  0xad   :  { %415 = vmatprep.subr.bf16.mxu0 %v145_v60  ;;  %v247_v27 = vpop.permute.xlu1 %246 }
  0xae   :  { %416 = vmatpush3.bf16.msra.mxu0 %v145_v60 }
  0xaf   :  { %429 = vmatprep.subr.bf16.mxu0 %v502_v18 }
  0xb1   :  { %418 = vmatmul.mubr.msk.bf16.vlgmr.msra.gmra.mxu0 %vm177_vm0, %v451_v61 }
  0xb2   :  { %433 = vmatprep.mubr.msk.bf16.mxu0 %vm503_vm1, %v502_v18 }
 0x171   :  { %v419_v1 = vpop.f32.mrf.mxu0 }
 0x172   :  { %v227_v2 = vadd.f32 %v419_v1, %v160_v63 }
 0x173   :  { %v218_v3 = vpop.f32.mrf.mxu0 }
 0x174   :  { %v219_v5 = vadd.f32 %v218_v3, %v150_v0  ;;  %462 = vtanh.f32 %v227_v2 }
 0x175   :  { %v420_v6 = vpop.f32.mrf.mxu0 }
 0x176   :  { %v230_v7 = vadd.f32 %v420_v6, %v165_v4 }
 0x177   :  { %v221_v9 = vpop.f32.mrf.mxu0 }
 0x178   :  { %464 = vtanh.f32 %v230_v7  ;;  %v222_v10 = vadd.f32 %v221_v9, %v155_v8 }
 0x179   :  { %466 = vtanh.f32 %v219_v5 }
 0x17a   :  { %468 = vtanh.f32 %v222_v10 }
 0x181   :  { %v463_v11 = vpop.eup %462 }
 0x185   :  { %v465_v12 = vpop.eup %464 }
 0x186   :  { %v467_v13 = vpop.eup %466  ;;  %v238_v14 = vpack.c.bf16 %v465_v12, %v463_v11 }
 0x187   :  { %v469_v15 = vpop.eup %468 }
 0x188   :  { %421 = vmatprep.subr.bf16.mxu1 %v238_v14  ;;  %v237_v16 = vpack.c.bf16 %v469_v15, %v467_v13 }
 0x189   :  { %422 = vmatpush3.bf16.msra.mxu1 %v238_v14 }
 0x18a   :  { %423 = vmatprep.subr.bf16.mxu1 %v237_v16 }
 0x18d   :  { %424 = vmatpush3.bf16.msra.mxu1 %v237_v16 }
 0x190   :  { %426 = vmatmul.mubr.msk.bf16.vlgmr.msra.gmra.mxu1 %vm177_vm0, %v453_v17 }
 0x250   :  { %v427_v21 = vpop.f32.mrf.mxu1 }
 0x251   :  { %v318_v22 = vadd.f32 %v427_v21, %v252_v19 }
 0x252   :  { %v309_v23 = vpop.f32.mrf.mxu1 }
 0x253   :  { %470 = vtanh.f32 %v318_v22  ;;  %v310_v29 = vadd.f32 %v309_v23, %v242_v25 }
 0x254   :  { %v428_v24 = vpop.f32.mrf.mxu1 }
 0x255   :  { %v321_v26 = vadd.f32 %v428_v24, %v257_v20 }
 0x256   :  { %v312_v28 = vpop.f32.mrf.mxu1 }
 0x257   :  { %472 = vtanh.f32 %v321_v26  ;;  %v313_v30 = vadd.f32 %v312_v28, %v247_v27 }
 0x259   :  { %474 = vtanh.f32 %v313_v30 }
 0x25a   :  { %476 = vtanh.f32 %v310_v29 }
 0x260   :  { %v471_v31 = vpop.eup %470 }
 0x264   :  { %v473_v32 = vpop.eup %472 }
 0x265   :  { %v329_v33 = vpack.c.bf16 %v473_v32, %v471_v31 }
 0x266   :  { %v475_v34 = vpop.eup %474 }
 0x267   :  { %430 = vmatpush3.bf16.msra.mxu0 %v329_v33  ;;  %v477_v35 = vpop.eup %476 }
 0x268   :  { %431 = vmatprep.subr.bf16.mxu0 %v502_v18  ;;  %v328_v36 = vpack.c.bf16 %v475_v34, %v477_v35 }
 0x26b   :  { %432 = vmatpush3.bf16.msra.mxu0 %v328_v36 }
 0x26e   :  { %434 = vmatmul.mubr.msk.bf16.vlgmr.msra.gmra.mxu0 %vm177_vm0, %v58_v37 }
 0x32e   :  { %v372_v39 = vpop.f32.mrf.mxu0 }
 0x32f   :  { %v373_v40 = vadd.f32 %v372_v39, %v333_v38 }
 0x330   :  { %v435_v41 = vpop.f32.mrf.mxu0 }
 0x331   :  { %378 = vst [vmem:[#allocation2] sm:$0x3] %v373_v40 }
 0x332   :  { %v375_v42 = vpop.f32.mrf.mxu0 }
 0x333   :  { %489 = shalt.err (!%p486_p4)
}
 0x334   :  { %388 = dma.vmem_to_hbm [thread:$0]  %s386_s26, 32, %s641_s9, [#allocation3]   ;;  %v436_v43 = vpop.f32.mrf.mxu0 }
 0x335   :  { %498 = dma.done.wait [#allocation3], 32  }
 0x336   :  { %499 = vsyncadd [#allocation3], 4294967264 }
 0x337   :  { %392 = vsyncpa [#allocation3], 1 }

</bundles_post_ra>
